<compile_context>
chip_gen: v7x
topology: tpu7x:2x2x1
jax: 0.10.0
libtpu: 0.0.40
codegen_flags: <defaults>
</compile_context>

<pallas_src>
from typing import NamedTuple
import functools

import numpy as np
import jax
import jax.numpy as jnp
from jax import lax
from jax.experimental import pallas as pl
from jax.experimental.pallas import tpu as pltpu


class UnpoolInfo(NamedTuple):
    edge_index: jnp.ndarray
    cluster: jnp.ndarray
    batch: jnp.ndarray


def _round_up(v, m):
    return ((v + m - 1) // m) * m


# --------------------------------------------------------------------------------------
# Pallas kernel 1: per-node projections of the edge-score Linear(2F, 1).
#   p = x @ [W_src | W_dst]   so that   lin(cat(x[src], x[dst])) = p[src,0] + p[dst,1] + b
# --------------------------------------------------------------------------------------
def _node_proj_kernel(x_ref, w_ref, p_ref):
    p_ref[...] = jnp.dot(x_ref[...], w_ref[...], preferred_element_type=jnp.float32)


def node_proj_pallas(x_p, w2_p):
    NP, _ = x_p.shape
    WC = w2_p.shape[1]
    return pl.pallas_call(
        _node_proj_kernel,
        out_shape=jax.ShapeDtypeStruct((NP, WC), jnp.float32),
        in_specs=[pl.BlockSpec(memory_space=pltpu.MemorySpace.VMEM)] * 2,
        out_specs=pl.BlockSpec(memory_space=pltpu.MemorySpace.VMEM),
    )(x_p, w2_p)


# --------------------------------------------------------------------------------------
# Pallas kernel 2 (fused): connected components + cluster pooling.
#   inputs  (all padded to NP = round_up(N, 8), FP = round_up(F, 8)):
#     S    [NP,NP]  dense edge-score adjacency
#     A    [NP,NP]  dense 0/1 adjacency
#     Msym [NP,NP]  symmetrized contracted adjacency + I (0/1)
#     x    [NP,FP]  node features
#   outputs:
#     x_out_full [NP,FP]  pooled features, rows indexed by component root (= min node index)
#     adj_full   [NP,NP]  C^T A C with zeroed diagonal, rows/cols indexed by component root
#     labels     [NP,1]   per-node component root label (int32)
# --------------------------------------------------------------------------------------
def _pool_cc_kernel(s_ref, a_ref, m_ref, x_ref, xout_ref, adj_ref, lab_ref,
                    *, n_iter, np_pad):
    f32 = jnp.float32
    msym = m_ref[...]

    # Weak connected components: transitive closure via log2(N) boolean squarings (MXU).
    M = msym
    for _ in range(n_iter):
        M = (jnp.dot(M, M, preferred_element_type=f32) > 0.0).astype(f32)

    col = lax.broadcasted_iota(jnp.int32, (np_pad, np_pad), 1).astype(f32)
    row = lax.broadcasted_iota(jnp.int32, (np_pad, np_pad), 0).astype(f32)

    # Component label = smallest reachable node index (padded all-zero rows get sentinel np_pad).
    lab = jnp.min(jnp.where(M > 0.0, col, float(np_pad)), axis=-1, keepdims=True)  # [NP,1]
    lab_ref[...] = lab.astype(jnp.int32)

    # One-hot cluster assignment C (columns indexed by component root).
    cf = (col == lab).astype(f32)                                                   # [NP,NP]

    # Singleton nodes (no incident contracted edge): S[i, i] = 1.0
    single = jnp.sum(msym, axis=-1, keepdims=True) == 1.0                           # [NP,1]
    diag = row == col
    s = jnp.where(jnp.logical_and(diag, single), 1.0, s_ref[...])

    # x_out = (S @ C)^T @ x  — contractions over dim 0 via dot_general (no explicit .T).
    sc = jnp.dot(s, cf, preferred_element_type=f32)                                 # [NP(n),NP(k)]
    xout_ref[...] = lax.dot_general(
        sc, x_ref[...], (((0,), (0,)), ((), ())), preferred_element_type=f32)       # [NP(k),FP]

    # coarse adjacency = C^T @ A @ C with zeroed diagonal (fill_diagonal_(0)).
    ac = jnp.dot(a_ref[...], cf, preferred_element_type=f32)                        # [NP(n),NP(k)]
    adj = lax.dot_general(cf, ac, (((0,), (0,)), ((), ())), preferred_element_type=f32)
    adj_ref[...] = jnp.where(diag, 0.0, adj)


def pool_cc_pallas(S_p, A_p, M_p, x_p, n_iter):
    # For multi-graph batches at scale, add a leading 'parallel' grid axis over graphs
    # (shards across v7x's 2 TensorCores); gridless is optimal for this single tiny graph.
    NP = S_p.shape[0]
    FP = x_p.shape[1]
    kernel = functools.partial(_pool_cc_kernel, n_iter=n_iter, np_pad=NP)
    return pl.pallas_call(
        kernel,
        out_shape=(
            jax.ShapeDtypeStruct((NP, FP), jnp.float32),
            jax.ShapeDtypeStruct((NP, NP), jnp.float32),
            jax.ShapeDtypeStruct((NP, 1), jnp.int32),
        ),
        in_specs=[pl.BlockSpec(memory_space=pltpu.MemorySpace.VMEM)] * 4,
        out_specs=(pl.BlockSpec(memory_space=pltpu.MemorySpace.VMEM),) * 3,
    )(S_p, A_p, M_p, x_p)


# --------------------------------------------------------------------------------------
# Host-side union-find: used ONLY by the numerical self-check in __main__ (the actual
# forward pass computes connected components on-device inside the Pallas kernel).
# --------------------------------------------------------------------------------------
def _weak_connected_components(n, edges):
    parent = list(range(n))

    def find(i):
        while parent[i] != i:
            parent[i] = parent[parent[i]]
            i = parent[i]
        return i

    for u, v in edges:
        ru, rv = find(int(u)), find(int(v))
        if ru != rv:
            parent[rv] = ru

    labels = {}
    cluster = np.empty(n, dtype=np.int64)
    for i in range(n):
        r = find(i)
        if r not in labels:
            labels[r] = len(labels)
        cluster[i] = labels[r]
    return cluster, len(labels)


# --------------------------------------------------------------------------------------
# ClusterPooling forward (edge_score_method='tanh', dropout=0.0 -> no-op, threshold=0.0)
# --------------------------------------------------------------------------------------
def cluster_pooling_forward(x, edge_index, batch, weight, bias, threshold=0.0):
    x = jnp.asarray(x, jnp.float32)
    edge_index_np = np.asarray(edge_index)
    batch_np = np.asarray(batch)
    N, F = x.shape

    # remove self loops (host preprocessing of the host-side edge list; data-dependent E)
    keep = edge_index_np[0] != edge_index_np[1]
    edge_index_np = edge_index_np[:, keep]
    src = jnp.asarray(edge_index_np[0], jnp.int32)
    dst = jnp.asarray(edge_index_np[1], jnp.int32)

    NP = max(8, _round_up(N, 8))
    FP = max(8, _round_up(F, 8))

    # padded node features (shared by both kernels)
    x_p = jnp.zeros((NP, FP), jnp.float32).at[:N, :F].set(x)

    # Linear(2F,1) split into per-node projections: columns [W_src | W_dst], lane-padded to 8.
    w = jnp.asarray(weight, jnp.float32).reshape(2 * F)
    w2_p = (jnp.zeros((FP, 8), jnp.float32)
            .at[:F, 0].set(w[:F])
            .at[:F, 1].set(w[F:]))
    proj = node_proj_pallas(x_p, w2_p)                                   # [NP, 8]

    # edge score = tanh(p_src[src] + p_dst[dst] + bias); dropout p=0.0 is a no-op.
    # TODO(synk): only the default 'tanh' scoring is implemented (sigmoid/log_softmax omitted).
    edge_score = jnp.tanh(proj[src, 0] + proj[dst, 1] + bias)            # [E], on device
    contract = (edge_score > threshold).astype(jnp.float32)

    # dense padded matrices built by on-device scatters (no host sync of the scores)
    S_p = jnp.zeros((NP, NP), jnp.float32).at[src, dst].add(edge_score)
    A_p = jnp.zeros((NP, NP), jnp.float32).at[src, dst].add(1.0)
    idx = jnp.arange(N)
    M_p = (jnp.zeros((NP, NP), jnp.float32)
           .at[src, dst].add(contract)
           .at[dst, src].add(contract)
           .at[idx, idx].add(1.0))
    M_p = (M_p > 0.0).astype(jnp.float32)                                # symmetrized + I

    n_iter = max(1, int(np.ceil(np.log2(max(N, 2)))))
    xout_full, adj_full, labels = pool_cc_pallas(S_p, A_p, M_p, x_p, n_iter)

    # host syncs only for data-dependent shapes (cluster count K, nnz of coarse adjacency)
    labels_np, adj_np = jax.device_get((labels, adj_full))
    labels_np = labels_np[:N, 0]
    roots, cluster_np = np.unique(labels_np, return_inverse=True)        # scipy label ordering
    K = int(roots.size)

    cluster = jnp.asarray(cluster_np, jnp.int32)
    x_out = xout_full[jnp.asarray(roots, jnp.int32)][:, :F]              # [K, F], stays on device

    # dense_to_sparse on the coarse adjacency (data-dependent edge count -> host)
    sub = adj_np[np.ix_(roots, roots)]
    r, c = np.nonzero(sub)
    edge_index_out = jnp.asarray(np.stack([r, c]).astype(np.int32))

    # batch_out[cluster[i]] = batch[i]
    batch_j = jnp.asarray(batch_np, jnp.int32)
    batch_out = jnp.zeros((K,), jnp.int32).at[cluster].set(batch_j)

    unpool_info = UnpoolInfo(jnp.asarray(edge_index_np, jnp.int32), cluster, batch_j)
    return x_out, edge_index_out, batch_out, unpool_info


# --------------------------------------------------------------------------------------
if __name__ == "__main__":
    key = jax.random.PRNGKey(0)
    N, F = 12, 8  # nodes, in_channels

    k_x, k_w, k_b = jax.random.split(key, 3)
    x = jax.random.normal(k_x, (N, F), jnp.float32)

    # Linear(2*in_channels, 1) parameters (PyTorch-style uniform bounds)
    bound = 1.0 / np.sqrt(2 * F)
    weight = jax.random.uniform(k_w, (2 * F, 1), jnp.float32, -bound, bound)
    bias = float(jax.random.uniform(k_b, (), jnp.float32, -bound, bound))

    # two small graphs (includes one self-loop to exercise the filtering path)
    edge_index = np.array(
        [[0, 1, 1, 2, 3, 4, 5, 0, 2, 6, 7, 8, 9, 10, 11, 7],
         [1, 0, 2, 3, 4, 5, 0, 3, 2, 7, 8, 6, 10, 11, 9, 9]], dtype=np.int32)
    batch = np.array([0] * 6 + [1] * 6, dtype=np.int32)

    x_out, ei_out, batch_out, info = cluster_pooling_forward(
        x, edge_index, batch, weight, bias)
    jax.block_until_ready(x_out)
    jax.block_until_ready(batch_out)

    # ---------------- numpy reference check ----------------
    x_np = np.asarray(x)
    w_np = np.asarray(weight)
    keep = edge_index[0] != edge_index[1]
    ei = edge_index[:, keep]
    ea = np.concatenate([x_np[ei[0]], x_np[ei[1]]], axis=-1)
    score_ref = np.tanh(ea @ w_np[:, 0] + bias)
    cl_ref, K_ref = _weak_connected_components(N, ei[:, score_ref > 0.0].T)
    C_ref = np.eye(K_ref, dtype=np.float32)[cl_ref]
    S_ref = np.zeros((N, N), np.float32)
    A_ref = np.zeros((N, N), np.float32)
    Ac_ref = np.zeros((N, N), np.float32)
    for e in range(ei.shape[1]):
        S_ref[ei[0, e], ei[1, e]] += score_ref[e]
        A_ref[ei[0, e], ei[1, e]] += 1.0
        if score_ref[e] > 0.0:
            Ac_ref[ei[0, e], ei[1, e]] += 1.0
    single_ref = (Ac_ref.sum(-1) + Ac_ref.sum(-2)) == 0.0
    S_ref[np.arange(N)[single_ref], np.arange(N)[single_ref]] = 1.0
    x_out_ref = (S_ref @ C_ref).T @ x_np
    adj_ref = C_ref.T @ A_ref @ C_ref
    np.fill_diagonal(adj_ref, 0.0)
    r_ref, c_ref = np.nonzero(adj_ref)
    batch_out_ref = np.zeros(K_ref, np.int32)
    batch_out_ref[cl_ref] = batch

    assert np.asarray(x_out).shape == (K_ref, F)
    assert np.array_equal(np.asarray(info.cluster), cl_ref), "cluster mismatch"
    assert np.allclose(np.asarray(x_out), x_out_ref, atol=1e-4), "x_out mismatch"
    assert np.array_equal(np.asarray(ei_out), np.stack([r_ref, c_ref])), "edge_index_out mismatch"
    assert np.array_equal(np.asarray(batch_out), batch_out_ref), "batch_out mismatch"
    assert np.asarray(batch_out).shape == (K_ref,)

    print("KERNEL_OK")
</pallas_src>

<mosaic_0001>
module attributes {stable_mosaic.version = 11 : i64} {
  func.func @_node_proj_kernel(%arg0: memref<16x8xf32, #tpu.memory_space<vmem>>, %arg1: memref<8x8xf32, #tpu.memory_space<vmem>>, %arg2: memref<16x8xf32, #tpu.memory_space<vmem>>) attributes {dimension_semantics = [], scalar_prefetch = 0 : i64, scratch_operands = 0 : i64, tpu.core_type = #tpu.core_type<tc>} {
    %c0 = arith.constant 0 : index
    %c0_0 = arith.constant 0 : index
    %0 = vector.load %arg0[%c0, %c0_0] : memref<16x8xf32, #tpu.memory_space<vmem>>, vector<16x8xf32>
    %c0_1 = arith.constant 0 : index
    %c0_2 = arith.constant 0 : index
    %1 = vector.load %arg1[%c0_1, %c0_2] : memref<8x8xf32, #tpu.memory_space<vmem>>, vector<8x8xf32>
    %cst = arith.constant dense<0.000000e+00> : vector<16x8xf32>
    %2 = tpu.matmul %0, %1, %cst {dimension_numbers = #tpu.dot_dimension_numbers<[1], [0], [0], [1], [0, 0, 1, 1], [], []>} : vector<16x8xf32>, vector<8x8xf32>, vector<16x8xf32> -> vector<16x8xf32>
    %c0_3 = arith.constant 0 : index
    %c0_4 = arith.constant 0 : index
    %3 = vector.load %arg2[%c0_3, %c0_4] : memref<16x8xf32, #tpu.memory_space<vmem>>, vector<16x8xf32>
    tpu.vector_store %arg2[%c0_3, %c0_4], %2 {strides = array<i32>} : memref<16x8xf32, #tpu.memory_space<vmem>>, vector<16x8xf32>,
    return
  }
}

</mosaic_0001>

<bundles_post_ra>
// kernel: tpu_custom_call.1
= control target key start
LH: loop header
LB: loop body
LE: loop exit
PB: predicated region body
PF: predicated region fallthrough
CT: control target
= control target key end

     0   :  { %vm14_vm0 = vcmask 64512   ;;  %s142_s1 = inlined_call_operand.vmem [shape: f32[8,8], index: 1, kind: input, shape index: {}]   ;;  %s143_s0 = inlined_call_operand.vmem [shape: f32[16,8], index: 0, kind: input, shape index: {}]   ;;  %s144_s2 = inlined_call_operand.vmem [shape: f32[16,8], index: 2, kind: output, shape index: {}]  }
   0x1   :  { %v13_v0 = vld [vmem:[%s142_s1] sm:$0xff]  ;;  %v12_v2 = vld [vmem:[%s143_s0 + $0x8] sm:$0xff] }
   0x2   :  { %v11_v1 = vld [vmem:[%s143_s0] sm:$0xff]  ;;  %107 = vmatprep.subr.mxu0 %v13_v0 }
   0x3   :  { %109 = vmatprep.mubr.msk.f32.mxu0 %vm14_vm0, %v11_v1  ;;  %108 = vmatpush3.msra.mxu0 %v13_v0 }
   0x4   :  { %110 = vmatmul.mubr.msk.f32.vlgmr.msra.gmra.mrb[0].mxu0 %vm14_vm0, %v12_v2 }
  0xd7   :  { %v111_v3 = vpop.f32.mrb[0].mxu0 }
  0xd8   :  { %97 = vst.msk [vmem:[%s144_s2 + $0x8] sm:$0xff] %vm14_vm0, %v111_v3  ;;  %v87_v4 = vpop.f32.mrb[1].mxu0 }
  0xd9   :  { %96 = vst.msk [vmem:[%s144_s2] sm:$0xff] %vm14_vm0, %v87_v4 }

</bundles_post_ra>
